<compile_context>
chip_gen: v7x
topology: tpu7x:2x2x1
jax: 0.10.0
libtpu: 0.0.40
codegen_flags: <defaults>
</compile_context>

<pallas_src>
import functools

import jax
import jax.numpy as jnp
from jax import lax
from jax.experimental import pallas as pl
from jax.experimental.pallas import tpu as pltpu

LANE = 128
_BLOCK_BYTES_CAP = 4 * 1024 * 1024     # ~4 MiB per block: safe on v5e / v6e / v7x
_VMEM_LIMIT_BYTES = 32 * 1024 * 1024   # explicit scoped-VMEM budget for both passes
_SQRT3 = 1.7320508075688772


def _round_up(x, m):
    return (x + m - 1) // m * m


def _layout(total, dtype):
    """Pick (rows, block_rows, num_blocks) for a lane-dense (rows, 128) slab."""
    itemsize = jnp.dtype(dtype).itemsize
    gran = max(8, 32 // itemsize)                     # f32: 8, bf16: 16, int8/fp8: 32
    cap_rows = max(gran, _BLOCK_BYTES_CAP // (LANE * itemsize))
    cap_rows = (cap_rows // gran) * gran
    rows_needed = pl.cdiv(total, LANE)
    block_rows = min(cap_rows, _round_up(rows_needed, gran))
    rows = _round_up(rows_needed, block_rows)
    return rows, block_rows, rows // block_rows


def _to_slab(x):
    """Flatten + zero-pad to a (rows, 128) slab in the native dtype (no f32 copy)."""
    total = x.size
    rows, block_rows, num_blocks = _layout(total, x.dtype)
    flat = x.reshape(-1)
    pad = rows * LANE - total
    if pad:
        flat = jnp.pad(flat, (0, pad))                # zeros: neutral for sum / sumsq
    return flat.reshape(rows, LANE), block_rows, num_blocks


# --------------------------------------------------------------------------- #
# Kernel 1: tiled global reduction -> per-shard (8,128) partial sum / sumsq    #
# --------------------------------------------------------------------------- #
def _stats_kernel(x_ref, sum_ref, sq_ref):
    # Output blocks are resident across the (trailing, "arbitrary") reduction axis.
    @pl.when(pl.program_id(1) == 0)
    def _():
        sum_ref[...] = jnp.zeros_like(sum_ref)
        sq_ref[...] = jnp.zeros_like(sq_ref)

    x = x_ref[...].astype(jnp.float32)
    xr = x.reshape(-1, 8, LANE)                       # sublane-group view, VPU adds only
    sum_ref[...] += jnp.sum(xr, axis=0, keepdims=True)
    sq_ref[...] += jnp.sum(xr * xr, axis=0, keepdims=True)


def _compute_stats(x2d, block_rows, num_blocks):
    # Leading "parallel" axis shards the reduction across v7x's two TensorCores;
    # harmless (sequential) on single-TC chips and in interpret mode.
    ns = 2 if (num_blocks >= 2 and num_blocks % 2 == 0) else 1
    steps = num_blocks // ns
    part_spec = pl.BlockSpec((1, 8, LANE), lambda s, i: (s, 0, 0))
    sums, sqs = pl.pallas_call(
        _stats_kernel,
        out_shape=(
            jax.ShapeDtypeStruct((ns, 8, LANE), jnp.float32),
            jax.ShapeDtypeStruct((ns, 8, LANE), jnp.float32),
        ),
        grid_spec=pltpu.PrefetchScalarGridSpec(
            num_scalar_prefetch=0,
            grid=(ns, steps),
            in_specs=[pl.BlockSpec((block_rows, LANE),
                                   lambda s, i: (s * steps + i, 0))],
            out_specs=[part_spec, part_spec],
        ),
        compiler_params=pltpu.CompilerParams(
            dimension_semantics=("parallel", "arbitrary"),
            vmem_limit_bytes=_VMEM_LIMIT_BYTES,
        ),
    )(x2d)
    # Tiny (ns,8,128) partials: final cross-lane reduce done by XLA in the wrapper.
    return jnp.sum(sums), jnp.sum(sqs)


# --------------------------------------------------------------------------- #
# Kernel 2: noise injection with a pure-jnp in-kernel PRNG (hash + Irwin-Hall) #
# --------------------------------------------------------------------------- #
def _fmix32(h):
    """murmur3 finalizer: high-quality 32-bit mixer, VPU integer ops only."""
    h = h ^ (h >> jnp.uint32(16))
    h = h * jnp.uint32(0x85EBCA6B)
    h = h ^ (h >> jnp.uint32(13))
    h = h * jnp.uint32(0xC2B2AE35)
    h = h ^ (h >> jnp.uint32(16))
    return h


def _noise_kernel(seed_ref, x_ref, o_ref, *, block_rows):
    shape = x_ref.shape
    row = lax.broadcasted_iota(jnp.int32, shape, 0)
    col = lax.broadcasted_iota(jnp.int32, shape, 1)
    # Globally unique element id -> noise is independent of tiling / megacore split.
    gidx = (row + pl.program_id(0) * block_rows) * LANE + col
    h = gidx.astype(jnp.uint32)
    seed = seed_ref[0].astype(jnp.uint32)

    k1 = _fmix32(h * jnp.uint32(0x9E3779B9) + seed)
    k2 = _fmix32((h ^ jnp.uint32(0x6C62272E)) * jnp.uint32(0xC2B2AE35)
                 + (seed ^ jnp.uint32(0x27D4EB2F)))

    def _u16(bits):
        v = bits.astype(jnp.int32).astype(jnp.float32)     # values <= 65535
        return (v + jnp.float32(0.5)) * jnp.float32(1.0 / 65536.0)

    u0 = _u16(k1 & jnp.uint32(0xFFFF))
    u1 = _u16(k1 >> jnp.uint32(16))
    u2 = _u16(k2 & jnp.uint32(0xFFFF))
    u3 = _u16(k2 >> jnp.uint32(16))

    # Irwin-Hall(4) approximate standard normal (mean 0, var 1), VPU-only.
    # TODO(synk): tails truncated at ~+-3.46 sigma vs. torch.randn's exact Gaussian.
    z = (u0 + u1 + u2 + u3 - jnp.float32(2.0)) * jnp.float32(_SQRT3)

    x = x_ref[...].astype(jnp.float32)
    o_ref[...] = (x + z * jnp.float32(0.01)).astype(o_ref.dtype)


def _apply_noise(x2d, seed_i32, block_rows, num_blocks):
    rows, _ = x2d.shape
    kern = functools.partial(_noise_kernel, block_rows=block_rows)
    return pl.pallas_call(
        kern,
        out_shape=jax.ShapeDtypeStruct((rows, LANE), x2d.dtype),
        grid_spec=pltpu.PrefetchScalarGridSpec(
            num_scalar_prefetch=1,
            grid=(num_blocks,),
            in_specs=[pl.BlockSpec((block_rows, LANE), lambda i, seed: (i, 0))],
            out_specs=pl.BlockSpec((block_rows, LANE), lambda i, seed: (i, 0)),
        ),
        compiler_params=pltpu.CompilerParams(
            dimension_semantics=("parallel",),
            vmem_limit_bytes=_VMEM_LIMIT_BYTES,
        ),
    )(jnp.asarray([seed_i32], dtype=jnp.int32), x2d)


# --------------------------------------------------------------------------- #
# Module wrapper                                                               #
# --------------------------------------------------------------------------- #
def homomorphic_bootstrapping(encrypted, noise_seed, noise_threshold=0.001):
    """Pallas-backed equivalent of HomomorphicBootstrapping.forward.

    encrypted : NCHW array (any float dtype, any total size).
    noise_seed: int seed for the in-kernel noise (randn_like * 0.01 equivalent).
    Returns (bootstrapped, std, noise_applied_flag).
    """
    orig_shape = encrypted.shape
    total = encrypted.size
    x2d, block_rows, num_blocks = _to_slab(encrypted)

    # Global std (Bessel-corrected, matching torch.std default).
    s, ssq = _compute_stats(x2d, block_rows, num_blocks)
    n = jnp.float32(total)
    mean = s / n
    # NOTE: E[x^2]-E[x]^2 in f32 can lose accuracy when |mean| >> std; acceptable here.
    var = (ssq - n * mean * mean) / (n - 1.0)
    std = jnp.sqrt(jnp.maximum(var, 0.0))

    flag = std > jnp.float32(noise_threshold)
    seed_i32 = jnp.asarray(noise_seed, dtype=jnp.int32)

    # Data-dependent branch: skip the whole second HBM pass when noise is low.
    out2d = lax.cond(
        flag,
        lambda x_: _apply_noise(x_, seed_i32, block_rows, num_blocks),
        lambda x_: x_,
        x2d,
    )
    out_flat = out2d.reshape(-1)
    if out_flat.size != total:
        out_flat = out_flat[:total]
    return out_flat.reshape(orig_shape), std, flag


# --------------------------------------------------------------------------- #
# Demo / self-test                                                             #
# --------------------------------------------------------------------------- #
if __name__ == "__main__":
    key = jax.random.PRNGKey(0)
    k_x, _ = jax.random.split(key)

    # Small NCHW input (module was exercised with (1, 3, 224, 224); scaled down).
    x = jax.random.normal(k_x, (2, 4, 16, 16), dtype=jnp.float32)

    out, std, flag = homomorphic_bootstrapping(x, noise_seed=1234, noise_threshold=0.001)
    out = jax.block_until_ready(out)

    # --- std must match torch.std (ddof=1) semantics ---
    std_ref = jnp.std(x, ddof=1)
    assert jnp.allclose(std, std_ref, rtol=1e-5, atol=1e-5), (std, std_ref)
    assert bool(flag)  # randn input -> std ~ 1 > 0.001 -> bootstrapping active

    # --- added noise ~ randn_like * 0.01 (statistical check; in-kernel PRNG
    #     cannot bit-match torch/jax normals) ---
    diff = (out - x).ravel()
    diff_mean = float(jnp.mean(diff))
    diff_std = float(jnp.std(diff))
    assert abs(diff_mean) < 2e-3, diff_mean
    assert 0.0085 < diff_std < 0.0115, diff_std
    assert out.shape == x.shape and out.dtype == x.dtype

    # --- passthrough branch: tiny-amplitude input -> std <= threshold -> unchanged ---
    x_small = x * 1e-4
    out2, std2, flag2 = homomorphic_bootstrapping(x_small, noise_seed=1234,
                                                  noise_threshold=0.001)
    out2 = jax.block_until_ready(out2)
    assert not bool(flag2)
    assert jnp.array_equal(out2, x_small)

    # --- native-dtype (bf16) path (packed sublane granularity handled) ---
    x_bf16 = x.astype(jnp.bfloat16)
    out3, _, _ = homomorphic_bootstrapping(x_bf16, noise_seed=7)
    out3 = jax.block_until_ready(out3)
    assert out3.shape == x_bf16.shape and out3.dtype == jnp.bfloat16

    # --- non-multiple-of-1024 total: padding path must work and std must match ---
    x_odd = jax.random.normal(k_x, (1, 3, 17, 13), dtype=jnp.float32)
    out4, std4, flag4 = homomorphic_bootstrapping(x_odd, noise_seed=3)
    out4 = jax.block_until_ready(out4)
    assert out4.shape == x_odd.shape
    assert jnp.allclose(std4, jnp.std(x_odd, ddof=1), rtol=1e-5, atol=1e-5)

    print("KERNEL_OK")
</pallas_src>

<mosaic_0001>
module attributes {stable_mosaic.version = 11 : i64} {
  func.func @_stats_kernel(%arg0: i32, %arg1: i32, %arg2: memref<16x128xf32, #tpu.memory_space<vmem>>, %arg3: memref<1x8x128xf32, #tpu.memory_space<vmem>>, %arg4: memref<1x8x128xf32, #tpu.memory_space<vmem>>) attributes {dimension_semantics = [#tpu.dimension_semantics<parallel>, #tpu.dimension_semantics<arbitrary>], iteration_bounds = array<i64: 1, 1>, scalar_prefetch = 0 : i64, scratch_operands = 0 : i64, tpu.core_type = #tpu.core_type<tc>, window_params = [{transform_indices = @transform_0, window_bounds = array<i64: 16, 128>}, {transform_indices = @transform_1, window_bounds = array<i64: 1, 8, 128>}, {transform_indices = @transform_2, window_bounds = array<i64: 1, 8, 128>}]} {
    %c0_i32 = arith.constant 0 : i32
    %0 = arith.cmpi eq, %arg1, %c0_i32 : i32
    %1 = arith.extui %0 : i1 to i32
    %c0_i32_0 = arith.constant 0 : i32
    %2 = arith.cmpi ne, %1, %c0_i32_0 : i32
    scf.if %2 {
      %cst_15 = arith.constant 0.000000e+00 : f32
      %16 = vector.broadcast %cst_15 : f32 to vector<1x8x128xf32>
      %c0_16 = arith.constant 0 : index
      %c0_17 = arith.constant 0 : index
      %c0_18 = arith.constant 0 : index
      %17 = vector.load %arg3[%c0_16, %c0_17, %c0_18] : memref<1x8x128xf32, #tpu.memory_space<vmem>>, vector<1x8x128xf32>
      tpu.vector_store %arg3[%c0_16, %c0_17, %c0_18], %16 {strides = array<i32>} : memref<1x8x128xf32, #tpu.memory_space<vmem>>, vector<1x8x128xf32>,
      %cst_19 = arith.constant 0.000000e+00 : f32
      %18 = vector.broadcast %cst_19 : f32 to vector<1x8x128xf32>
      %c0_20 = arith.constant 0 : index
      %c0_21 = arith.constant 0 : index
      %c0_22 = arith.constant 0 : index
      %19 = vector.load %arg4[%c0_20, %c0_21, %c0_22] : memref<1x8x128xf32, #tpu.memory_space<vmem>>, vector<1x8x128xf32>
      tpu.vector_store %arg4[%c0_20, %c0_21, %c0_22], %18 {strides = array<i32>} : memref<1x8x128xf32, #tpu.memory_space<vmem>>, vector<1x8x128xf32>,
    } else {
    }
    %c0 = arith.constant 0 : index
    %c0_1 = arith.constant 0 : index
    %3 = vector.load %arg2[%c0, %c0_1] : memref<16x128xf32, #tpu.memory_space<vmem>>, vector<16x128xf32>
    %4 = vector.shape_cast %3 : vector<16x128xf32> to vector<2x8x128xf32>
    %c0_2 = arith.constant 0 : index
    %c0_3 = arith.constant 0 : index
    %c0_4 = arith.constant 0 : index
    %5 = vector.load %arg3[%c0_2, %c0_3, %c0_4] : memref<1x8x128xf32, #tpu.memory_space<vmem>>, vector<1x8x128xf32>
    %cst = arith.constant dense<0.000000e+00> : vector<8x128xf32>
    %6 = vector.multi_reduction <add>, %4, %cst [0] : vector<2x8x128xf32> to vector<8x128xf32>
    %7 = vector.shape_cast %6 : vector<8x128xf32> to vector<1x8x128xf32>
    %8 = arith.addf %5, %7 : vector<1x8x128xf32>
    %c0_5 = arith.constant 0 : index
    %c0_6 = arith.constant 0 : index
    %c0_7 = arith.constant 0 : index
    %9 = vector.load %arg3[%c0_5, %c0_6, %c0_7] : memref<1x8x128xf32, #tpu.memory_space<vmem>>, vector<1x8x128xf32>
    tpu.vector_store %arg3[%c0_5, %c0_6, %c0_7], %8 {strides = array<i32>} : memref<1x8x128xf32, #tpu.memory_space<vmem>>, vector<1x8x128xf32>,
    %c0_8 = arith.constant 0 : index
    %c0_9 = arith.constant 0 : index
    %c0_10 = arith.constant 0 : index
    %10 = vector.load %arg4[%c0_8, %c0_9, %c0_10] : memref<1x8x128xf32, #tpu.memory_space<vmem>>, vector<1x8x128xf32>
    %11 = arith.mulf %4, %4 : vector<2x8x128xf32>
    %cst_11 = arith.constant dense<0.000000e+00> : vector<8x128xf32>
    %12 = vector.multi_reduction <add>, %11, %cst_11 [0] : vector<2x8x128xf32> to vector<8x128xf32>
    %13 = vector.shape_cast %12 : vector<8x128xf32> to vector<1x8x128xf32>
    %14 = arith.addf %10, %13 : vector<1x8x128xf32>
    %c0_12 = arith.constant 0 : index
    %c0_13 = arith.constant 0 : index
    %c0_14 = arith.constant 0 : index
    %15 = vector.load %arg4[%c0_12, %c0_13, %c0_14] : memref<1x8x128xf32, #tpu.memory_space<vmem>>, vector<1x8x128xf32>
    tpu.vector_store %arg4[%c0_12, %c0_13, %c0_14], %14 {strides = array<i32>} : memref<1x8x128xf32, #tpu.memory_space<vmem>>, vector<1x8x128xf32>,
    return
  }
  func.func @transform_0(%arg0: i32, %arg1: i32) -> (i32, i32) {
    %c1_i32 = arith.constant 1 : i32
    %0 = arith.muli %arg0, %c1_i32 : i32
    %1 = arith.addi %0, %arg1 : i32
    %c0_i32 = arith.constant 0 : i32
    %c0_i32_0 = arith.constant 0 : i32
    return %1, %c0_i32 : i32, i32
  }
  func.func @transform_1(%arg0: i32, %arg1: i32) -> (i32, i32, i32) {
    %c0_i32 = arith.constant 0 : i32
    %c0_i32_0 = arith.constant 0 : i32
    %c0_i32_1 = arith.constant 0 : i32
    return %arg0, %c0_i32, %c0_i32_0 : i32, i32, i32
  }
  func.func @transform_2(%arg0: i32, %arg1: i32) -> (i32, i32, i32) {
    %c0_i32 = arith.constant 0 : i32
    %c0_i32_0 = arith.constant 0 : i32
    %c0_i32_1 = arith.constant 0 : i32
    return %arg0, %c0_i32, %c0_i32_0 : i32, i32, i32
  }
}

</mosaic_0001>

<bundles_post_ra>
// kernel: tpu_custom_call.1
= control target key start
LH: loop header
LB: loop body
LE: loop exit
PB: predicated region body
PF: predicated region fallthrough
CT: control target
= control target key end

     0   :  { %8 = vsyncpa [#allocation3], 0  ;;  %s213_s0 = inlined_call_operand.hbm [shape: f32[16,128], index: 0, kind: input, shape index: {}]   ;;  %s214_s1 = inlined_call_operand.hbm [shape: f32[1,8,128], index: 1, kind: output, shape index: {0}]   ;;  %s215_s2 = inlined_call_operand.hbm [shape: f32[1,8,128], index: 2, kind: output, shape index: {1}]  }
   0x1   :  { %9 = vsyncpa [#allocation4], 0 }
   0x2   :  { %10 = vsyncpa [#allocation7], 0  ;;  %s157_s9 = smov [#allocation2]   ;;  %s85_s13 = scalar_lea.hbm %s213_s0, 256 }
   0x3   :  { %s20_s10 = sshll.u32 %s157_s9, 4  ;;  %p86_p0 = scmp.ne.s32.totalorder %s213_s0, %s85_s13  ;;  %s21_s10 = int_to_ptr.vmem [resolvable:$true] %s20_s10 }
   0x4   :  { %p89_p1 = scmp.lt.u32.totalorder %s85_s13, %s213_s0 }
   0x6   :  { %p91_p2 = pnand %p89_p1, %p86_p0 }
   0x8   :  { %94 = shalt.err (!%p91_p2)
}
   0x9   :  { %s95_s18 = scalar_lea.vmem %s21_s10, 256  ;;  %p100_p4 = scmp.lt.s32.totalorder %s21_s10, %s21_s10 }
   0xa   :  { %p96_p3 = scmp.ne.s32.totalorder %s21_s10, %s95_s18  ;;  %p101_p5 = scmp.lt.s32.totalorder %s95_s18, %s95_s18 }
   0xc   :  { %p102_p6 = por %p101_p5, %p100_p4 }
   0xe   :  { %p103_p7 = pnand %p102_p6, %p96_p3 }
  0x10   :  { %106 = shalt.err (!%p103_p7)
}
  0x11   :  { %s158_s19 = smov 128   ;;  %s159_s20 = smov 8  }
  0x12   :  { %26 = dma.hbm_to_vmem [thread:$0]  %s213_s0, 256, %s21_s10, [#allocation3], %s158_s19, %s158_s19, %s159_s20  }
  0x13   :  { %151 = dma.done.wait [#allocation3], 256  }
  0x14   :  { %152 = vsyncadd [#allocation3], 4294967040  ;;  %v38_v0 = vld [vmem:[#allocation2] sm:$0xff]  ;;  %v39_v1 = vld [vmem:[#allocation2 + $0x8] sm:$0xff]  ;;  %s160_s23 = smov [#allocation5]   ;;  %s161_s25 = smov [#allocation6]  }
  0x15   :  { %s56_s24 = sshll.u32 %s160_s23, 4  ;;  %v41_v2 = vadd.f32 %v39_v1, %v38_v0  ;;  %v45_v3 = vmul.f32 %v38_v0, %v38_v0  ;;  %v46_v4 = vmul.f32 %v39_v1, %v39_v1  ;;  %s66_s26 = sshll.u32 %s161_s25, 4  ;;  %s57_s24 = int_to_ptr.vmem [resolvable:$true] %s56_s24  ;;  %s67_s26 = int_to_ptr.vmem [resolvable:$true] %s66_s26 }
  0x16   :  { %s107_s27 = scalar_lea.vmem %s57_s24, 128  ;;  %p112_p9 = scmp.lt.s32.totalorder %s57_s24, %s57_s24 }
  0x17   :  { %v47_v5 = vadd.f32 %v46_v4, %v45_v3  ;;  %43 = vst [vmem:[#allocation5] sm:$0xff] %v41_v2  ;;  %p108_p8 = scmp.ne.s32.totalorder %s57_s24, %s107_s27  ;;  %p113_p10 = scmp.lt.s32.totalorder %s107_s27, %s107_s27 }
  0x19   :  { %p114_p11 = por %p113_p10, %p112_p9 }
  0x1b   :  { %p115_p12 = pnand %p114_p11, %p108_p8 }
  0x1d   :  { %118 = shalt.err (!%p115_p12)
}
  0x1e   :  { %s119_s29 = scalar_lea.hbm %s214_s1, 128 }
  0x1f   :  { %p120_p13 = scmp.ne.s32.totalorder %s214_s1, %s119_s29  ;;  %p123_p0 = scmp.lt.u32.totalorder %s119_s29, %s214_s1 }
  0x21   :  { %p125_p1 = pnand %p123_p0, %p120_p13 }
  0x23   :  { %128 = shalt.err (!%p125_p1)
}
  0x24   :  { %59 = dma.vmem_to_hbm [thread:$0]  %s57_s24, 128, %s214_s1, [#allocation4]   ;;  %49 = vst [vmem:[#allocation6] sm:$0xff] %v47_v5 }
  0x25   :  { %s129_s8 = scalar_lea.vmem %s67_s26, 128  ;;  %p134_p3 = scmp.lt.s32.totalorder %s67_s26, %s67_s26 }
  0x26   :  { %p130_p2 = scmp.ne.s32.totalorder %s67_s26, %s129_s8  ;;  %p135_p4 = scmp.lt.s32.totalorder %s129_s8, %s129_s8 }
  0x28   :  { %p136_p5 = por %p135_p4, %p134_p3 }
  0x2a   :  { %p137_p6 = pnand %p136_p5, %p130_p2 }
  0x2c   :  { %140 = shalt.err (!%p137_p6)
}
  0x2d   :  { %s141_s11 = scalar_lea.hbm %s215_s2, 128 }
  0x2e   :  { %p142_p7 = scmp.ne.s32.totalorder %s215_s2, %s141_s11  ;;  %p145_p8 = scmp.lt.u32.totalorder %s141_s11, %s215_s2 }
  0x30   :  { %p147_p9 = pnand %p145_p8, %p142_p7 }
  0x32   :  { %150 = shalt.err (!%p147_p9)
}
  0x33   :  { %69 = dma.vmem_to_hbm [thread:$0]  %s67_s26, 128, %s215_s2, [#allocation7]  }
  0x34   :  { %153 = dma.done.wait [#allocation4], 128  }
  0x35   :  { %154 = vsyncadd [#allocation4], 4294967168 }
  0x36   :  { %155 = dma.done.wait [#allocation7], 128  }
  0x37   :  { %156 = vsyncadd [#allocation7], 4294967168 }
  0x38   :  { %76 = vsyncpa [#allocation3], 1 }
  0x39   :  { %77 = vsyncpa [#allocation4], 1 }
  0x3a   :  { %78 = vsyncpa [#allocation7], 1 }

</bundles_post_ra>
